<compile_context>
chip_gen: v7x
topology: tpu7x:2x2x1
jax: 0.10.0
libtpu: 0.0.40
codegen_flags: <defaults>
</compile_context>

<pallas_src>
import functools

import jax
import jax.numpy as jnp
from jax.experimental import pallas as pl
from jax.experimental.pallas import tpu as pltpu

LEAKY_SLOPE = 0.01
BN_EPS = 1e-5


# ----------------------------------------------------------------------------- kernel
def encoder_kernel(x_ref, p_ref, out_ref, *, n_hidden, feat, d_in0):
    """Fused Encoder forward.

    x_ref   : [B, d_in0]                input (raw, unpadded; d_in0 sublane-aligned)
    p_ref   : [(n_hidden+1)*feat + 8*(2*n_hidden+1), feat]
              rows [i*feat, (i+1)*feat)              : weight of matmul i (zero-padded)
              rows vec_base + 8*(2i)   (sublane 0)   : gamma_i
              rows vec_base + 8*(2i+1) (sublane 0)   : beta_i
              rows vec_base + 8*(2n)   (sublane 0)   : fused head bias
    out_ref : [B, feat]                 lane-dense concat(mean, logvar, zero padding)
    """
    vec_base = (n_hidden + 1) * feat
    h = x_ref[...]                                               # [B, d_in0] f32

    for i in range(n_hidden):                                    # static unroll
        if i == 0:
            w = p_ref[0:d_in0, :]                                # [d_in0, F]
        else:
            w = p_ref[i * feat:(i + 1) * feat, :]                # [F, F]
        # Linear (bias omitted: cancelled by the training-mode BN mean subtraction)
        h = jnp.dot(h, w, preferred_element_type=jnp.float32)    # [B, F]
        # BatchNorm1d, training mode: batch stats, biased variance, two-pass var
        mu = jnp.mean(h, axis=0, keepdims=True)                  # [1, F]
        d = h - mu
        var = jnp.mean(d * d, axis=0, keepdims=True)             # [1, F]
        gamma = p_ref[vec_base + 8 * (2 * i):vec_base + 8 * (2 * i) + 1, :]
        beta = p_ref[vec_base + 8 * (2 * i + 1):vec_base + 8 * (2 * i + 1) + 1, :]
        scale = gamma * jax.lax.rsqrt(var + BN_EPS)              # [1, F]
        h = d * scale + beta
        # LeakyReLU
        h = jnp.maximum(h, LEAKY_SLOPE * h)

    # Fused mean|logvar head: one matmul, one full-lane-width unmasked store.
    wh = p_ref[n_hidden * feat:(n_hidden + 1) * feat, :]          # [F, F]
    b_head = p_ref[vec_base + 8 * (2 * n_hidden):vec_base + 8 * (2 * n_hidden) + 1, :]
    out_ref[...] = jnp.dot(h, wh, preferred_element_type=jnp.float32) + b_head


# ------------------------------------------------------------------------ param packing
def pack_params(params, dims, model_mode="vae", is_batchnorm=True):
    """Pack ALL Encoder parameters into one VMEM-friendly buffer.

    Layout (feat = lane width, padded to a full vreg = 128):
      rows [i*feat, (i+1)*feat)   weight of matmul i, zero-padded to feat x feat
      rows vec_base + 8*j         j-th per-feature vector (gamma_1, beta_1, ...,
                                  gamma_n, beta_n, fused head bias), each on its own
                                  8-row-aligned segment (sublane-0 reads in the kernel)
    """
    # Dropping the hidden-layer Linear biases is only valid when training-mode
    # BatchNorm immediately follows each Linear (batch-mean subtraction cancels any
    # per-feature constant).  Guard against silent misuse.
    assert is_batchnorm, (
        "pack_params drops hidden-layer Linear biases; this is only correct when "
        "training-mode BatchNorm1d follows every hidden Linear (isBatchNorm=True).")

    n_hidden = len(dims) - 2
    d_latent = dims[-1]
    vae = model_mode in ("vae", "bvae")
    head_out = 2 * d_latent if vae else d_latent

    feat = max(list(dims[:-1]) + list(dims[1:-1]) + [head_out])
    feat = max(((feat + 7) // 8) * 8, 128)        # full-vreg lane width

    n_vec = 2 * n_hidden + 1
    vec_base = (n_hidden + 1) * feat
    packed = jnp.zeros((vec_base + 8 * n_vec, feat), jnp.float32)

    for i in range(1, n_hidden + 1):
        d_in, d_out = dims[i - 1], dims[i]
        seg = (i - 1) * feat
        # NOTE: hidden-layer biases b{i} intentionally NOT packed (see assert above).
        packed = packed.at[seg:seg + d_in, :d_out].set(params[f"w{i}"])
        packed = packed.at[vec_base + 8 * (2 * (i - 1)), :d_out].set(params[f"g{i}"])
        packed = packed.at[vec_base + 8 * (2 * (i - 1) + 1), :d_out].set(params[f"be{i}"])

    d_in = dims[-2]
    if vae:
        w_head = jnp.concatenate([params["wm"], params["wl"]], axis=1)
        b_head = jnp.concatenate([params["bm"], params["bl"]], axis=0)
    else:
        w_head, b_head = params["wm"], params["bm"]
    seg = n_hidden * feat
    packed = packed.at[seg:seg + d_in, :head_out].set(w_head)
    packed = packed.at[vec_base + 8 * (2 * n_hidden), :head_out].set(b_head)
    return packed


# --------------------------------------------------------------------------- entry point
def encoder_forward(x, packed, *, dims, model_mode="vae"):
    """Whole Encoder forward in one Pallas call (working set ~220 KB, fits any VMEM)."""
    B = x.shape[0]
    n_hidden = len(dims) - 2
    d_latent = dims[-1]
    vae = model_mode in ("vae", "bvae")
    feat = packed.shape[1]

    x = x.astype(jnp.float32)
    d_in0 = dims[0]
    if d_in0 % 8:                                 # sublane-align only if needed
        pad = (-d_in0) % 8
        x = jnp.pad(x, ((0, 0), (0, pad)))
        d_in0 += pad                              # extra rows in packed are zero

    vmem = pl.BlockSpec(memory_space=pltpu.MemorySpace.VMEM)
    out = pl.pallas_call(
        functools.partial(encoder_kernel, n_hidden=n_hidden, feat=feat, d_in0=d_in0),
        out_shape=jax.ShapeDtypeStruct((B, feat), jnp.float32),
        in_specs=[vmem, vmem],
        out_specs=vmem,
    )(x, packed)

    mean = out[:, :d_latent]
    if vae:
        return mean, out[:, d_latent:2 * d_latent]
    return mean, mean   # non-VAE: logvar = mean, exactly as in the PyTorch forward


# -------------------------------------------------------------------------------- init
def init_params(key, dims):
    """Deterministic PyTorch-style init. Linear weights stored as [in, out]."""
    n_hidden = len(dims) - 2
    keys = jax.random.split(key, 2 * (n_hidden + 2))
    kit = iter(keys)

    def lin(fan_in, fan_out):
        bound = float(fan_in) ** -0.5
        kw, kb = next(kit), next(kit)
        w = jax.random.uniform(kw, (fan_in, fan_out), jnp.float32, -bound, bound)
        b = jax.random.uniform(kb, (fan_out,), jnp.float32, -bound, bound)
        return w, b

    p = {}
    for i in range(1, n_hidden + 1):
        w, b = lin(dims[i - 1], dims[i])
        p[f"w{i}"], p[f"b{i}"] = w, b
        p[f"g{i}"] = jnp.ones((dims[i],), jnp.float32)     # fresh BN: gamma=1
        p[f"be{i}"] = jnp.zeros((dims[i],), jnp.float32)   #           beta=0
    p["wm"], p["bm"] = lin(dims[-2], dims[-1])
    p["wl"], p["bl"] = lin(dims[-2], dims[-1])
    return p


# ---------------------------------------------------------------------------- reference
def encoder_reference(x, p, dims, model_mode="vae"):
    """Pure-JAX reference faithful to the PyTorch forward (incl. hidden-layer biases)."""
    h = x
    for i in range(1, len(dims) - 1):
        h = h @ p[f"w{i}"] + p[f"b{i}"]
        mu = h.mean(0, keepdims=True)
        var = ((h - mu) ** 2).mean(0, keepdims=True)       # biased (training-mode BN)
        h = (h - mu) / jnp.sqrt(var + BN_EPS) * p[f"g{i}"] + p[f"be{i}"]
        h = jnp.where(h > 0, h, LEAKY_SLOPE * h)
    mean = h @ p["wm"] + p["bm"]
    if model_mode in ("vae", "bvae"):
        logvar = h @ p["wl"] + p["bl"]
    else:
        logvar = mean
    return mean, logvar


if __name__ == "__main__":
    dims = (32, 64, 32, 16)     # options['dims']
    batch = 8
    model_mode = "vae"

    key = jax.random.PRNGKey(0)
    k_x, k_p = jax.random.split(key)
    x = jax.random.normal(k_x, (batch, dims[0]), jnp.float32)
    params = init_params(k_p, dims)
    packed = pack_params(params, dims, model_mode=model_mode, is_batchnorm=True)

    mean, logvar = encoder_forward(x, packed, dims=dims, model_mode=model_mode)
    jax.block_until_ready((mean, logvar))

    ref_mean, ref_logvar = encoder_reference(x, params, dims, model_mode=model_mode)
    assert mean.shape == (batch, dims[-1]) and logvar.shape == (batch, dims[-1])
    assert jnp.allclose(mean, ref_mean, atol=1e-4, rtol=1e-4)
    assert jnp.allclose(logvar, ref_logvar, atol=1e-4, rtol=1e-4)

    print("KERNEL_OK")
</pallas_src>

<mosaic_0001>
module attributes {stable_mosaic.version = 11 : i64} {
  func.func @encoder_kernel(%arg0: memref<8x32xf32, #tpu.memory_space<vmem>>, %arg1: memref<424x128xf32, #tpu.memory_space<vmem>>, %arg2: memref<8x128xf32, #tpu.memory_space<vmem>>) attributes {dimension_semantics = [], scalar_prefetch = 0 : i64, scratch_operands = 0 : i64, tpu.core_type = #tpu.core_type<tc>} {
    %c0 = arith.constant 0 : index
    %c0_0 = arith.constant 0 : index
    %0 = vector.load %arg0[%c0, %c0_0] : memref<8x32xf32, #tpu.memory_space<vmem>>, vector<8x32xf32>
    %c0_1 = arith.constant 0 : index
    %c0_2 = arith.constant 0 : index
    %1 = vector.load %arg1[%c0_1, %c0_2] : memref<424x128xf32, #tpu.memory_space<vmem>>, vector<32x128xf32>
    %cst = arith.constant dense<0.000000e+00> : vector<8x128xf32>
    %2 = tpu.matmul %0, %1, %cst {dimension_numbers = #tpu.dot_dimension_numbers<[1], [0], [0], [1], [0, 0, 1, 1], [], []>} : vector<8x32xf32>, vector<32x128xf32>, vector<8x128xf32> -> vector<8x128xf32>
    %cst_3 = arith.constant dense<0.000000e+00> : vector<128xf32>
    %3 = vector.multi_reduction <add>, %2, %cst_3 [0] : vector<8x128xf32> to vector<128xf32>
    %4 = vector.shape_cast %3 : vector<128xf32> to vector<1x128xf32>
    %cst_4 = arith.constant 8.000000e+00 : f32
    %5 = vector.broadcast %cst_4 : f32 to vector<1x128xf32>
    %6 = arith.divf %4, %5 : vector<1x128xf32>
    %7 = vector.broadcast %6 : vector<1x128xf32> to vector<8x128xf32>
    %8 = arith.subf %2, %7 : vector<8x128xf32>
    %9 = arith.mulf %8, %8 : vector<8x128xf32>
    %cst_5 = arith.constant dense<0.000000e+00> : vector<128xf32>
    %10 = vector.multi_reduction <add>, %9, %cst_5 [0] : vector<8x128xf32> to vector<128xf32>
    %11 = vector.shape_cast %10 : vector<128xf32> to vector<1x128xf32>
    %cst_6 = arith.constant 8.000000e+00 : f32
    %12 = vector.broadcast %cst_6 : f32 to vector<1x128xf32>
    %13 = arith.divf %11, %12 : vector<1x128xf32>
    %c384 = arith.constant 384 : index
    %c0_7 = arith.constant 0 : index
    %14 = vector.load %arg1[%c384, %c0_7] : memref<424x128xf32, #tpu.memory_space<vmem>>, vector<1x128xf32>
    %c392 = arith.constant 392 : index
    %c0_8 = arith.constant 0 : index
    %15 = vector.load %arg1[%c392, %c0_8] : memref<424x128xf32, #tpu.memory_space<vmem>>, vector<1x128xf32>
    %cst_9 = arith.constant 9.99999974E-6 : f32
    %16 = vector.broadcast %cst_9 : f32 to vector<1x128xf32>
    %17 = arith.addf %13, %16 : vector<1x128xf32>
    %18 = math.rsqrt %17 : vector<1x128xf32>
    %19 = arith.mulf %14, %18 : vector<1x128xf32>
    %20 = vector.broadcast %19 : vector<1x128xf32> to vector<8x128xf32>
    %21 = arith.mulf %8, %20 : vector<8x128xf32>
    %22 = vector.broadcast %15 : vector<1x128xf32> to vector<8x128xf32>
    %23 = arith.addf %21, %22 : vector<8x128xf32>
    %cst_10 = arith.constant 0.00999999977 : f32
    %24 = vector.broadcast %cst_10 : f32 to vector<8x128xf32>
    %25 = arith.mulf %24, %23 : vector<8x128xf32>
    %26 = arith.maximumf %23, %25 : vector<8x128xf32>
    %c128 = arith.constant 128 : index
    %c0_11 = arith.constant 0 : index
    %27 = vector.load %arg1[%c128, %c0_11] : memref<424x128xf32, #tpu.memory_space<vmem>>, vector<128x128xf32>
    %cst_12 = arith.constant dense<0.000000e+00> : vector<8x128xf32>
    %28 = tpu.matmul %26, %27, %cst_12 {dimension_numbers = #tpu.dot_dimension_numbers<[1], [0], [0], [1], [0, 0, 1, 1], [], []>} : vector<8x128xf32>, vector<128x128xf32>, vector<8x128xf32> -> vector<8x128xf32>
    %cst_13 = arith.constant dense<0.000000e+00> : vector<128xf32>
    %29 = vector.multi_reduction <add>, %28, %cst_13 [0] : vector<8x128xf32> to vector<128xf32>
    %30 = vector.shape_cast %29 : vector<128xf32> to vector<1x128xf32>
    %cst_14 = arith.constant 8.000000e+00 : f32
    %31 = vector.broadcast %cst_14 : f32 to vector<1x128xf32>
    %32 = arith.divf %30, %31 : vector<1x128xf32>
    %33 = vector.broadcast %32 : vector<1x128xf32> to vector<8x128xf32>
    %34 = arith.subf %28, %33 : vector<8x128xf32>
    %35 = arith.mulf %34, %34 : vector<8x128xf32>
    %cst_15 = arith.constant dense<0.000000e+00> : vector<128xf32>
    %36 = vector.multi_reduction <add>, %35, %cst_15 [0] : vector<8x128xf32> to vector<128xf32>
    %37 = vector.shape_cast %36 : vector<128xf32> to vector<1x128xf32>
    %cst_16 = arith.constant 8.000000e+00 : f32
    %38 = vector.broadcast %cst_16 : f32 to vector<1x128xf32>
    %39 = arith.divf %37, %38 : vector<1x128xf32>
    %c400 = arith.constant 400 : index
    %c0_17 = arith.constant 0 : index
    %40 = vector.load %arg1[%c400, %c0_17] : memref<424x128xf32, #tpu.memory_space<vmem>>, vector<1x128xf32>
    %c408 = arith.constant 408 : index
    %c0_18 = arith.constant 0 : index
    %41 = vector.load %arg1[%c408, %c0_18] : memref<424x128xf32, #tpu.memory_space<vmem>>, vector<1x128xf32>
    %cst_19 = arith.constant 9.99999974E-6 : f32
    %42 = vector.broadcast %cst_19 : f32 to vector<1x128xf32>
    %43 = arith.addf %39, %42 : vector<1x128xf32>
    %44 = math.rsqrt %43 : vector<1x128xf32>
    %45 = arith.mulf %40, %44 : vector<1x128xf32>
    %46 = vector.broadcast %45 : vector<1x128xf32> to vector<8x128xf32>
    %47 = arith.mulf %34, %46 : vector<8x128xf32>
    %48 = vector.broadcast %41 : vector<1x128xf32> to vector<8x128xf32>
    %49 = arith.addf %47, %48 : vector<8x128xf32>
    %cst_20 = arith.constant 0.00999999977 : f32
    %50 = vector.broadcast %cst_20 : f32 to vector<8x128xf32>
    %51 = arith.mulf %50, %49 : vector<8x128xf32>
    %52 = arith.maximumf %49, %51 : vector<8x128xf32>
    %c256 = arith.constant 256 : index
    %c0_21 = arith.constant 0 : index
    %53 = vector.load %arg1[%c256, %c0_21] : memref<424x128xf32, #tpu.memory_space<vmem>>, vector<128x128xf32>
    %c416 = arith.constant 416 : index
    %c0_22 = arith.constant 0 : index
    %54 = vector.load %arg1[%c416, %c0_22] : memref<424x128xf32, #tpu.memory_space<vmem>>, vector<1x128xf32>
    %cst_23 = arith.constant dense<0.000000e+00> : vector<8x128xf32>
    %55 = tpu.matmul %52, %53, %cst_23 {dimension_numbers = #tpu.dot_dimension_numbers<[1], [0], [0], [1], [0, 0, 1, 1], [], []>} : vector<8x128xf32>, vector<128x128xf32>, vector<8x128xf32> -> vector<8x128xf32>
    %56 = vector.broadcast %54 : vector<1x128xf32> to vector<8x128xf32>
    %57 = arith.addf %55, %56 : vector<8x128xf32>
    %c0_24 = arith.constant 0 : index
    %c0_25 = arith.constant 0 : index
    %58 = vector.load %arg2[%c0_24, %c0_25] : memref<8x128xf32, #tpu.memory_space<vmem>>, vector<8x128xf32>
    tpu.vector_store %arg2[%c0_24, %c0_25], %57 {strides = array<i32>} : memref<8x128xf32, #tpu.memory_space<vmem>>, vector<8x128xf32>,
    return
  }
}

</mosaic_0001>

<bundles_post_ra>
// kernel: tpu_custom_call.1
= control target key start
LH: loop header
LB: loop body
LE: loop exit
PB: predicated region body
PF: predicated region fallthrough
CT: control target
= control target key end

     0   :  { %7 = vsyncpa [#allocation3], 0  ;;  %s734_s0 = inlined_call_operand.hbm [shape: f32[8,32], index: 0, kind: input, shape index: {}]   ;;  %s735_s1 = inlined_call_operand.hbm [shape: f32[424,128], index: 1, kind: input, shape index: {}]   ;;  %s736_s2 = inlined_call_operand.hbm [shape: f32[8,128], index: 2, kind: output, shape index: {}]  }
   0x1   :  { %8 = vsyncpa [#allocation6], 0 }
   0x2   :  { %9 = vsyncpa [#allocation4], 0  ;;  %s640_s9 = smov [#allocation2]   ;;  %s641_s11 = smov [#allocation5]  }
   0x3   :  { %s16_s10 = sshll.u32 %s640_s9, 4  ;;  %s25_s12 = sshll.u32 %s641_s11, 4  ;;  %s17_s10 = int_to_ptr.vmem [resolvable:$true] %s16_s10  ;;  %s663_s12 = int_to_ptr.vmem [resolvable:$true] %s25_s12 }
   0x4   :  { %s568_s15 = scalar_lea.hbm %s734_s0, 128 }
   0x5   :  { %p569_p0 = scmp.ne.s32.totalorder %s734_s0, %s568_s15  ;;  %p572_p1 = scmp.lt.u32.totalorder %s568_s15, %s734_s0 }
   0x7   :  { %p574_p2 = pnand %p572_p1, %p569_p0 }
   0x9   :  { %577 = shalt.err (!%p574_p2)
}
   0xa   :  { %s578_s20 = scalar_lea.vmem %s17_s10, 128  ;;  %p583_p4 = scmp.lt.s32.totalorder %s17_s10, %s17_s10 }
   0xb   :  { %p579_p3 = scmp.ne.s32.totalorder %s17_s10, %s578_s20  ;;  %p584_p5 = scmp.lt.s32.totalorder %s578_s20, %s578_s20 }
   0xd   :  { %p585_p6 = por %p584_p5, %p583_p4 }
   0xf   :  { %p586_p7 = pnand %p585_p6, %p579_p3 }
  0x11   :  { %589 = shalt.err (!%p586_p7)
}
  0x12   :  { %19 = dma.hbm_to_vmem [thread:$0]  %s734_s0, 128, %s17_s10, [#allocation3]  }
  0x13   :  { %s590_s25 = scalar_lea.hbm %s735_s1, 6784 }
  0x14   :  { %p591_p8 = scmp.ne.s32.totalorder %s735_s1, %s590_s25  ;;  %p594_p9 = scmp.lt.u32.totalorder %s590_s25, %s735_s1 }
  0x16   :  { %p596_p10 = pnand %p594_p9, %p591_p8 }
  0x18   :  { %599 = shalt.err (!%p596_p10)
}
  0x19   :  { %s600_s30 = scalar_lea.vmem %s663_s12, 6784  ;;  %p605_p12 = scmp.lt.s32.totalorder %s663_s12, %s663_s12 }
  0x1a   :  { %p601_p11 = scmp.ne.s32.totalorder %s663_s12, %s600_s30  ;;  %p606_p13 = scmp.lt.s32.totalorder %s600_s30, %s600_s30 }
  0x1c   :  { %p607_p0 = por %p606_p13, %p605_p12 }
  0x1e   :  { %p608_p1 = pnand %p607_p0, %p601_p11 }
  0x20   :  { %611 = shalt.err (!%p608_p1)
}
  0x21   :  { %s642_s0 = smov 128   ;;  %s643_s3 = smov 8  }
  0x22   :  { %31 = dma.hbm_to_vmem [thread:$0]  %s735_s1, 6784, %s663_s12, [#allocation6], %s642_s0, %s642_s0, %s643_s3  }
  0x23   :  { %634 = dma.done.wait [#allocation3], 128  }
  0x24   :  { %635 = vsyncadd [#allocation3], 4294967168 }
  0x25   :  { %636 = dma.done.wait [#allocation6], 6784  }
  0x26   :  { %637 = vsyncadd [#allocation6], 4294960512  ;;  %v644_v0 = vmov 0.0|0.0   ;;  %vm645_vm0 = vmmov 0   ;;  %v646_v1 = vmov 0.0   ;;  %v39_v2 = vld [vmem:[#allocation5] sm:$0xff]  ;;  %v139_v52 = vlaneseq }
  0x27   :  { %502 = vmatprep.subr.bf16.mxu0 %v644_v0  ;;  %429 = vmatprep.mubr.msk.f32.mxu0 %vm645_vm0, %v646_v1  ;;  %v40_v3 = vld [vmem:[#allocation5 + $0x8] sm:$0xff]  ;;  %v41_v4 = vld [vmem:[#allocation5 + $0x10] sm:$0xff]  ;;  %v42_v6 = vld [vmem:[#allocation5 + $0x18] sm:$0xff]  ;;  %vm43_vm1 = vcmask 261120   ;;  %s647_s1 = smov [#allocation7]  }
  0x28   :  { %508 = vmatprep.subr.bf16.mxu1 %v644_v0  ;;  %464 = vmatprep.mubr.msk.f32.mxu1 %vm645_vm0, %v646_v1  ;;  %v503_v5 = vpack.c.bf16 %v40_v3, %v39_v2  ;;  %v506_v7 = vpack.c.bf16 %v42_v6, %v41_v4  ;;  %v38_v8 = vld [vmem:[#allocation2] sm:$0xff]  ;;  %v151_v9 = vld [vmem:[#allocation5 + $0x80] sm:$0xff]  ;;  %v152_v10 = vld [vmem:[#allocation5 + $0x88] sm:$0xff]  ;;  %v708_v53 = vshrl.u32 %v139_v52, 7  ;;  %s368_s6 = sshll.u32 %s647_s1, 4  ;;  %s369_s6 = int_to_ptr.vmem [resolvable:$true] %s368_s6 }
  0x29   :  { %v509_v11 = vpack.c.bf16 %v152_v10, %v151_v9  ;;  %v153_v12 = vld [vmem:[#allocation5 + $0x90] sm:$0xff]  ;;  %v154_v13 = vld [vmem:[#allocation5 + $0x98] sm:$0xff]  ;;  %v155_v15 = vld [vmem:[#allocation5 + $0xa0] sm:$0xff]  ;;  %s612_s7 = scalar_lea.vmem %s369_s6, 128  ;;  %p617_p3 = scmp.lt.s32.totalorder %s369_s6, %s369_s6 }
  0x2a   :  { %504 = vmatpush3.bf16.msra.mxu0 %v503_v5  ;;  %v512_v14 = vpack.c.bf16 %v154_v13, %v153_v12  ;;  %v156_v16 = vld [vmem:[#allocation5 + $0xa8] sm:$0xff]  ;;  %v157_v18 = vld [vmem:[#allocation5 + $0xb0] sm:$0xff]  ;;  %v158_v19 = vld [vmem:[#allocation5 + $0xb8] sm:$0xff]  ;;  %v141_v55 = vsub.s32 0, %v708_v53  ;;  %p613_p2 = scmp.ne.s32.totalorder %s369_s6, %s612_s7  ;;  %p618_p4 = scmp.lt.s32.totalorder %s612_s7, %s612_s7 }
  0x2b   :  { %505 = vmatprep.subr.bf16.mxu0 %v644_v0  ;;  %510 = vmatpush3.bf16.msra.mxu1 %v509_v11  ;;  %v515_v17 = vpack.c.bf16 %v156_v16, %v155_v15  ;;  %v518_v20 = vpack.c.bf16 %v158_v19, %v157_v18  ;;  %v159_v21 = vld [vmem:[#allocation5 + $0xc0] sm:$0xff]  ;;  %v160_v22 = vld [vmem:[#allocation5 + $0xc8] sm:$0xff]  ;;  %v161_v24 = vld [vmem:[#allocation5 + $0xd0] sm:$0xff] }
  0x2c   :  { %511 = vmatprep.subr.bf16.mxu1 %v644_v0  ;;  %v521_v23 = vpack.c.bf16 %v160_v22, %v159_v21  ;;  %v162_v25 = vld [vmem:[#allocation5 + $0xd8] sm:$0xff]  ;;  %v163_v27 = vld [vmem:[#allocation5 + $0xe0] sm:$0xff]  ;;  %v164_v28 = vld [vmem:[#allocation5 + $0xe8] sm:$0xff]  ;;  %p619_p5 = por %p618_p4, %p617_p3 }
  0x2d   :  { %v524_v26 = vpack.c.bf16 %v162_v25, %v161_v24  ;;  %v527_v29 = vpack.c.bf16 %v164_v28, %v163_v27  ;;  %v165_v30 = vld [vmem:[#allocation5 + $0xf0] sm:$0xff]  ;;  %v166_v31 = vld [vmem:[#allocation5 + $0xf8] sm:$0xff]  ;;  %v134_v54 = vld [vmem:[#allocation5 + $0x180] sm:$0x1] }
  0x2e   :  { %507 = vmatpush3.bf16.msra.mxu0 %v506_v7  ;;  %v530_v32 = vpack.c.bf16 %v166_v31, %v165_v30  ;;  %v379_v59 = vld [vmem:[#allocation5 + $0x188] ss:$0 sm:$0xff]  ;;  %v272_v4 = vld [vmem:[#allocation5 + $0x110] sm:$0xff]  ;;  %v273_v5 = vld [vmem:[#allocation5 + $0x118] sm:$0xff]  ;;  %p620_p6 = pnand %p619_p5, %p613_p2 }
  0x2f   :  { %532 = vmatprep.subr.bf16.mxu0 %v644_v0  ;;  %513 = vmatpush3.bf16.msra.mxu1 %v512_v14  ;;  %v271_v2 = vld [vmem:[#allocation5 + $0x108] sm:$0xff]  ;;  %v536_v6 = vpack.c.bf16 %v273_v5, %v272_v4  ;;  %v274_v7 = vld [vmem:[#allocation5 + $0x120] sm:$0xff]  ;;  %v276_v10 = vld [vmem:[#allocation5 + $0x130] sm:$0xff] }
  0x30   :  { %514 = vmatprep.subr.bf16.mxu1 %v644_v0  ;;  %v277_v11 = vld [vmem:[#allocation5 + $0x138] sm:$0xff]  ;;  %v278_v13 = vld [vmem:[#allocation5 + $0x140] sm:$0xff]  ;;  %v279_v14 = vld [vmem:[#allocation5 + $0x148] sm:$0xff] }
  0x31   :  { %430 = vmatmul.mubr.msk.f32.vlgmr.msra.gmra.mrb[0].mxu0 %vm43_vm1, %v38_v8  ;;  %v275_v8 = vld [vmem:[#allocation5 + $0x128] sm:$0xff]  ;;  %v542_v12 = vpack.c.bf16 %v277_v11, %v276_v10  ;;  %v545_v15 = vpack.c.bf16 %v279_v14, %v278_v13  ;;  %v280_v16 = vld [vmem:[#allocation5 + $0x150] sm:$0xff]  ;;  %v282_v19 = vld [vmem:[#allocation5 + $0x160] sm:$0xff] }
  0x32   :  { %499 = vmatprep.mubr.msk.f32.mxu0 %vm645_vm0, %v646_v1  ;;  %v270_v1 = vld [vmem:[#allocation5 + $0x100] sm:$0xff]  ;;  %v539_v9 = vpack.c.bf16 %v275_v8, %v274_v7  ;;  %v284_v22 = vld [vmem:[#allocation5 + $0x170] sm:$0xff] }
  0x33   :  { %516 = vmatpush3.bf16.msra.mxu1 %v515_v17  ;;  %v533_v3 = vpack.c.bf16 %v271_v2, %v270_v1  ;;  %v281_v17 = vld [vmem:[#allocation5 + $0x158] sm:$0xff]  ;;  %v381_v52 = vld [vmem:[#allocation5 + $0x1a0] ss:$0 sm:$0xff] }
  0x34   :  { %517 = vmatprep.subr.bf16.mxu1 %v644_v0  ;;  %v548_v18 = vpack.c.bf16 %v281_v17, %v280_v16 }
  0x35   :  { %534 = vmatpush3.bf16.msra.mxu0 %v533_v3 }
  0x36   :  { %535 = vmatprep.subr.bf16.mxu0 %v644_v0 }
  0x37   :  { %519 = vmatpush3.bf16.msra.mxu1 %v518_v20  ;;  %v283_v20 = vld [vmem:[#allocation5 + $0x168] sm:$0xff] }
  0x38   :  { %520 = vmatprep.subr.bf16.mxu1 %v644_v0  ;;  %v551_v21 = vpack.c.bf16 %v283_v20, %v282_v19 }
  0x39   :  { %537 = vmatpush3.bf16.msra.mxu0 %v536_v6 }
  0x3a   :  { %538 = vmatprep.subr.bf16.mxu0 %v644_v0 }
  0x3b   :  { %522 = vmatpush3.bf16.msra.mxu1 %v521_v23  ;;  %v285_v23 = vld [vmem:[#allocation5 + $0x178] sm:$0xff] }
  0x3c   :  { %523 = vmatprep.subr.bf16.mxu1 %v644_v0  ;;  %v554_v24 = vpack.c.bf16 %v285_v23, %v284_v22 }
  0x3d   :  { %540 = vmatpush3.bf16.msra.mxu0 %v539_v9 }
  0x3e   :  { %541 = vmatprep.subr.bf16.mxu0 %v644_v0 }
  0x3f   :  { %525 = vmatpush3.bf16.msra.mxu1 %v524_v26 }
  0x40   :  { %526 = vmatprep.subr.bf16.mxu1 %v644_v0 }
  0x41   :  { %543 = vmatpush3.bf16.msra.mxu0 %v542_v12 }
  0x42   :  { %544 = vmatprep.subr.bf16.mxu0 %v644_v0 }
  0x43   :  { %528 = vmatpush3.bf16.msra.mxu1 %v527_v29 }
  0x44   :  { %529 = vmatprep.subr.bf16.mxu1 %v644_v0 }
  0x45   :  { %546 = vmatpush3.bf16.msra.mxu0 %v545_v15 }
  0x46   :  { %547 = vmatprep.subr.bf16.mxu0 %v644_v0 }
  0x47   :  { %531 = vmatpush3.bf16.msra.mxu1 %v530_v32 }
  0x49   :  { %549 = vmatpush3.bf16.msra.mxu0 %v548_v18 }
  0x4a   :  { %550 = vmatprep.subr.bf16.mxu0 %v644_v0 }
  0x4d   :  { %552 = vmatpush3.bf16.msra.mxu0 %v551_v21 }
  0x4e   :  { %553 = vmatprep.subr.bf16.mxu0 %v644_v0 }
  0x51   :  { %555 = vmatpush3.bf16.msra.mxu0 %v554_v24 }
 0x104   :  { %v113_v33 = vpop.f32.mrb[0].mxu0 }
 0x105   :  { %v117_v34 = vrot.slane %v113_v33, 4  ;;  %v431_v35 = vpop.f32.mrb[1].mxu0 }
 0x107   :  { %v118_v36 = vadd.f32 %v117_v34, %v113_v33 }
 0x109   :  { %v119_v37 = vrot.slane %v118_v36, 2 }
 0x10b   :  { %v120_v38 = vadd.f32 %v119_v37, %v118_v36 }
 0x10d   :  { %v121_v39 = vrot.slane %v120_v38, 1 }
 0x10f   :  { %v122_v40 = vadd.f32 %v121_v39, %v120_v38 }
 0x111   :  { %v124_v41 = vmul.f32 0.125, %v122_v40 }
 0x113   :  { %v125_v42 = vsub.f32 %v113_v33, %v124_v41 }
 0x115   :  { %v126_v43 = vmul.f32 %v125_v42, %v125_v42 }
 0x117   :  { %v127_v44 = vrot.slane %v126_v43, 4 }
 0x119   :  { %v128_v45 = vadd.f32 %v127_v44, %v126_v43  ;;  %v253_v43 = vld [vmem:[#allocation5 + $0x190] sm:$0x1] }
 0x11b   :  { %v129_v46 = vrot.slane %v128_v45, 2 }
 0x11d   :  { %v130_v47 = vadd.f32 %v129_v46, %v128_v45 }
 0x11f   :  { %v131_v48 = vrot.slane %v130_v47, 1 }
 0x121   :  { %v132_v49 = vadd.f32 %v131_v48, %v130_v47  ;;  %v380_v47 = vld [vmem:[#allocation5 + $0x198] ss:$0 sm:$0xff] }
 0x123   :  { %v133_v50 = vmul.f32 0.125, %v132_v49 }
 0x125   :  { %v136_v51 = vadd.f32 1e-05, %v133_v50 }
 0x127   :  { %564 = vrsqrt.f32 %v136_v51 }
 0x131   :  { %v565_v56 = vpop.eup %564 }
 0x132   :  { %v138_v57 = vmul.f32 %v565_v56, %v134_v54 }
 0x134   :  { %v142_v58 = vrot.slane %v138_v57, %v141_v55 }
 0x136   :  { %v143_v60 = vmul.f32 %v142_v58, %v125_v42 }
 0x138   :  { %v148_v61 = vadd.f32 %v379_v59, %v143_v60 }
 0x13a   :  { %v149_v62 = vmul.f32 0.01, %v148_v61 }
 0x13c   :  { %v150_v63 = vmax.f32 %v148_v61, %v149_v62 }
 0x13e   :  { %465 = vmatmul.mubr.f32.vlgmr.msra.gmra.mrb[0].mxu1 %v150_v63 }
 0x211   :  { %v233_v25 = vpop.f32.mrb[0].mxu1 }
 0x212   :  { %v237_v26 = vrot.slane %v233_v25, 4  ;;  %v466_v27 = vpop.f32.mrb[1].mxu1 }
 0x214   :  { %v238_v28 = vadd.f32 %v237_v26, %v233_v25 }
 0x216   :  { %v239_v29 = vrot.slane %v238_v28, 2 }
 0x218   :  { %v240_v30 = vadd.f32 %v239_v29, %v238_v28 }
 0x21a   :  { %v241_v31 = vrot.slane %v240_v30, 1 }
 0x21c   :  { %v242_v32 = vadd.f32 %v241_v31, %v240_v30 }
 0x21e   :  { %v243_v33 = vmul.f32 0.125, %v242_v32 }
 0x220   :  { %v244_v34 = vsub.f32 %v233_v25, %v243_v33 }
 0x222   :  { %v245_v35 = vmul.f32 %v244_v34, %v244_v34 }
 0x224   :  { %v246_v36 = vrot.slane %v245_v35, 4 }
 0x226   :  { %v247_v37 = vadd.f32 %v246_v36, %v245_v35 }
 0x228   :  { %v248_v38 = vrot.slane %v247_v37, 2 }
 0x22a   :  { %v249_v39 = vadd.f32 %v248_v38, %v247_v37 }
 0x22c   :  { %v250_v0 = vrot.slane %v249_v39, 1 }
 0x22e   :  { %v251_v40 = vadd.f32 %v250_v0, %v249_v39 }
 0x230   :  { %v252_v41 = vmul.f32 0.125, %v251_v40 }
 0x232   :  { %v255_v42 = vadd.f32 1e-05, %v252_v41 }
 0x234   :  { %566 = vrsqrt.f32 %v255_v42 }
 0x23e   :  { %v567_v44 = vpop.eup %566 }
 0x23f   :  { %v257_v45 = vmul.f32 %v567_v44, %v253_v43 }
 0x241   :  { %v261_v46 = vrot.slane %v257_v45, %v141_v55 }
 0x243   :  { %v262_v48 = vmul.f32 %v261_v46, %v244_v34 }
 0x245   :  { %v267_v49 = vadd.f32 %v380_v47, %v262_v48 }
 0x247   :  { %v268_v50 = vmul.f32 0.01, %v267_v49 }
 0x249   :  { %v269_v51 = vmax.f32 %v267_v49, %v268_v50 }
 0x24b   :  { %500 = vmatmul.mubr.f32.vlgmr.msra.gmra.mrb[2].mxu0 %v269_v51 }
 0x31e   :  { %v357_v54 = vpop.f32.mrb[2].mxu0 }
 0x31f   :  { %v358_v56 = vadd.f32 %v381_v52, %v357_v54  ;;  %v501_v57 = vpop.f32.mrb[3].mxu0 }
 0x321   :  { %361 = vst [vmem:[#allocation7] sm:$0xff] %v358_v56 }
 0x322   :  { %623 = shalt.err (!%p620_p6)
}
 0x323   :  { %s624_s10 = scalar_lea.hbm %s736_s2, 128 }
 0x324   :  { %p625_p7 = scmp.ne.s32.totalorder %s736_s2, %s624_s10  ;;  %p628_p8 = scmp.lt.u32.totalorder %s624_s10, %s736_s2 }
 0x326   :  { %p630_p9 = pnand %p628_p8, %p625_p7 }
 0x328   :  { %633 = shalt.err (!%p630_p9)
}
 0x329   :  { %371 = dma.vmem_to_hbm [thread:$0]  %s369_s6, 128, %s736_s2, [#allocation4]  }
 0x32a   :  { %638 = dma.done.wait [#allocation4], 128  }
 0x32b   :  { %639 = vsyncadd [#allocation4], 4294967168 }
 0x32c   :  { %375 = vsyncpa [#allocation3], 1 }
 0x32d   :  { %376 = vsyncpa [#allocation6], 1 }
 0x32e   :  { %377 = vsyncpa [#allocation4], 1 }

</bundles_post_ra>
